<compile_context>
chip_gen: v6e
topology: v6e:2x2x1
jax: 0.10.0
libtpu: 0.0.40
codegen_flags: <defaults>
</compile_context>

<pallas_src>
import functools
import math

import numpy as np
import jax
import jax.numpy as jnp
from jax.experimental import pallas as pl
from jax.experimental.pallas import tpu as pltpu


# ----------------------------------------------------------------------------
# Pallas kernel: one (batch, head) step of BertXAttention forward
# ----------------------------------------------------------------------------
def _bert_xattn_kernel(hs_ref, ctx_ref, mask_ref,
                       wq_ref, bq_ref, wk_ref, bk_ref, wv_ref, bv_ref,
                       wo_ref, bo_ref, g_ref, beta_ref,
                       out_ref, scores_ref,
                       o_acc, hs_bf,
                       *, num_heads, eps):
    h = pl.program_id(1)

    @pl.when(h == 0)
    def _init():
        # fresh batch element: zero the output-dense accumulator and cast the
        # residual input to bf16 once (reused by every head step).
        o_acc[...] = jnp.zeros_like(o_acc)
        hs_bf[...] = hs_ref[0].astype(jnp.bfloat16)

    # ---- per-head Q/K/V projections: full-D contraction on the MXU --------
    # (scale 1/sqrt(head_size) is already folded into wq/bq by the wrapper)
    q = jnp.dot(hs_bf[...], wq_ref[0], preferred_element_type=jnp.float32) + bq_ref[0]
    k = jnp.dot(ctx_ref[0], wk_ref[0], preferred_element_type=jnp.float32) + bk_ref[0]
    v = jnp.dot(ctx_ref[0], wv_ref[0], preferred_element_type=jnp.float32) + bv_ref[0]
    q = q.astype(jnp.bfloat16)            # (Tq, hd)
    k = k.astype(jnp.bfloat16)            # (Tk, hd)
    v = v.astype(jnp.bfloat16)            # (Tk, hd)

    # ---- scaled dot-product attention scores (+mask) ----------------------
    s = jax.lax.dot_general(q, k, (((1,), (1,)), ((), ())),
                            preferred_element_type=jnp.float32)   # (Tq, Tk)
    s = s + mask_ref[0]                   # single (1,Tk) broadcast per step
    scores_ref[0, 0] = s                  # returned pre-softmax scores (f32)

    # ---- softmax over keys (f32, stable); EUP reciprocal for the denom ----
    m = jnp.max(s, axis=-1, keepdims=True)
    e = jnp.exp(s - m)
    denom = jnp.sum(e, axis=-1, keepdims=True)
    p = (e * pl.reciprocal(denom, approx=True)).astype(jnp.bfloat16)
    # TODO(synk): attention_probs dropout not applied (inference / eval mode).

    # ---- probs @ V, then this head's slice of the output dense ------------
    head_ctx = jnp.dot(p, v, preferred_element_type=jnp.float32).astype(jnp.bfloat16)
    # ctx_layer @ Wo == sum_h head_ctx_h @ Wo[h*hd:(h+1)*hd, :]
    o_acc[...] += jnp.dot(head_ctx, wo_ref[0], preferred_element_type=jnp.float32)

    @pl.when(h == num_heads - 1)
    def _finish():
        # BertSelfOutput: dense bias + residual + LayerNorm (dropout = identity)
        # TODO(synk): hidden_dropout not applied (inference / eval mode).
        x = o_acc[...] + bo_ref[...] + hs_ref[0]
        u = jnp.mean(x, axis=-1, keepdims=True)
        xc = x - u
        var = jnp.mean(xc * xc, axis=-1, keepdims=True)
        xn = xc * jax.lax.rsqrt(var + eps)
        out_ref[0] = (g_ref[...] * xn + beta_ref[...]).astype(out_ref.dtype)


# ----------------------------------------------------------------------------
# wrapper: reshape weights into per-head slices, cast to bf16, launch kernel
# ----------------------------------------------------------------------------
def bert_xattention_pallas(params, hidden_states, ctx_tensor, ctx_att_mask,
                           *, num_heads, layer_norm_eps=1e-12):
    """Returns (attention_output (B,Tq,D), attention_scores (B,nH,Tq,Tk))."""
    B, Tq, D = hidden_states.shape
    _, Tk, Dctx = ctx_tensor.shape
    head_size = D // num_heads
    scale = 1.0 / math.sqrt(head_size)
    bf16, f32 = jnp.bfloat16, jnp.float32

    def split_cols(w, din):     # (din, D) -> (nH, din, hd), bf16
        return w.reshape(din, num_heads, head_size).transpose(1, 0, 2).astype(bf16)

    def split_bias(b):          # (1, D) -> (nH, 1, hd), f32
        return b.reshape(num_heads, 1, head_size).astype(f32)

    wq3 = split_cols(params["wq"] * scale, D)          # scale folded into Wq/bq
    bq3 = split_bias(params["bq"] * scale)
    wk3 = split_cols(params["wk"], Dctx)
    bk3 = split_bias(params["bk"])
    wv3 = split_cols(params["wv"], Dctx)
    bv3 = split_bias(params["bv"])
    wo3 = params["wo"].reshape(num_heads, head_size, D).astype(bf16)
    bo = params["bo"].astype(f32)
    gamma = params["ln_g"].astype(f32)
    beta = params["ln_b"].astype(f32)

    hs = hidden_states.astype(f32)                     # f32 kept for residual
    ctx_bf = ctx_tensor.astype(bf16)                   # only feeds K/V matmuls
    mask = ctx_att_mask.reshape(B, 1, Tk).astype(f32)  # additive mask

    kernel = functools.partial(_bert_xattn_kernel,
                               num_heads=num_heads, eps=layer_norm_eps)

    headw = lambda shape: pl.BlockSpec(shape, lambda b, h: (h, 0, 0))
    const = lambda shape: pl.BlockSpec(shape, lambda b, h: tuple(0 for _ in shape))

    return pl.pallas_call(
        kernel,
        out_shape=(jax.ShapeDtypeStruct((B, Tq, D), jnp.float32),
                   jax.ShapeDtypeStruct((B, num_heads, Tq, Tk), jnp.float32)),
        grid_spec=pltpu.PrefetchScalarGridSpec(
            num_scalar_prefetch=0,
            grid=(B, num_heads),
            in_specs=[
                pl.BlockSpec((1, Tq, D),    lambda b, h: (b, 0, 0)),   # hidden (f32)
                pl.BlockSpec((1, Tk, Dctx), lambda b, h: (b, 0, 0)),   # context (bf16)
                pl.BlockSpec((1, 1, Tk),    lambda b, h: (b, 0, 0)),   # additive mask
                headw((1, D, head_size)),      # Wq head slice (bf16, pre-scaled)
                headw((1, 1, head_size)),      # bq head slice
                headw((1, Dctx, head_size)),   # Wk head slice
                headw((1, 1, head_size)),      # bk head slice
                headw((1, Dctx, head_size)),   # Wv head slice
                headw((1, 1, head_size)),      # bv head slice
                headw((1, head_size, D)),      # Wo head-row slice
                const((1, D)),                 # bo
                const((1, D)),                 # LN gamma
                const((1, D)),                 # LN beta
            ],
            out_specs=[
                pl.BlockSpec((1, Tq, D),       lambda b, h: (b, 0, 0)),
                pl.BlockSpec((1, 1, Tq, Tk),   lambda b, h: (b, h, 0, 0)),
            ],
            scratch_shapes=[
                pltpu.VMEM((Tq, D), jnp.float32),    # output-dense accumulator
                pltpu.VMEM((Tq, D), jnp.bfloat16),   # bf16 copy of hidden_states
            ],
        ),
        compiler_params=pltpu.CompilerParams(
            dimension_semantics=("parallel", "arbitrary"),
            vmem_limit_bytes=32 * 1024 * 1024),
    )(hs, ctx_bf, mask,
      wq3, bq3, wk3, bk3, wv3, bv3, wo3, bo, gamma, beta)


# ----------------------------------------------------------------------------
# pure-JAX f32 reference (mirrors the PyTorch module) for correctness checking
# ----------------------------------------------------------------------------
def _ref_xattn(params, hs, ctx, mask, *, num_heads, eps=1e-12):
    B, Tq, D = hs.shape
    Tk = ctx.shape[1]
    hd = D // num_heads

    q = hs @ params["wq"] + params["bq"][0]
    k = ctx @ params["wk"] + params["bk"][0]
    v = ctx @ params["wv"] + params["bv"][0]

    def split(x, T):
        return x.reshape(B, T, num_heads, hd).transpose(0, 2, 1, 3)

    qh, kh, vh = split(q, Tq), split(k, Tk), split(v, Tk)
    scores = jnp.einsum("bhqd,bhkd->bhqk", qh, kh) / math.sqrt(hd)
    scores = scores + mask.reshape(B, 1, 1, Tk)
    probs = jax.nn.softmax(scores, axis=-1)
    ctxl = jnp.einsum("bhqk,bhkd->bhqd", probs, vh)
    ctxl = ctxl.transpose(0, 2, 1, 3).reshape(B, Tq, D)

    o = ctxl @ params["wo"] + params["bo"][0]
    x = o + hs
    u = x.mean(-1, keepdims=True)
    var = ((x - u) ** 2).mean(-1, keepdims=True)
    out = params["ln_g"][0] * (x - u) / jnp.sqrt(var + eps) + params["ln_b"][0]
    return out, scores


if __name__ == "__main__":
    # config: hidden_size=32, num_attention_heads=2, ctx_dim=32, eps=1e-12
    B, Tq, Tk, D, nH = 2, 8, 8, 32, 2
    eps = 1e-12

    key = jax.random.PRNGKey(0)
    k = jax.random.split(key, 12)

    params = {
        "wq": jax.random.normal(k[0], (D, D), jnp.float32) * 0.1,
        "bq": jax.random.normal(k[1], (1, D), jnp.float32) * 0.1,
        "wk": jax.random.normal(k[2], (D, D), jnp.float32) * 0.1,
        "bk": jax.random.normal(k[3], (1, D), jnp.float32) * 0.1,
        "wv": jax.random.normal(k[4], (D, D), jnp.float32) * 0.1,
        "bv": jax.random.normal(k[5], (1, D), jnp.float32) * 0.1,
        "wo": jax.random.normal(k[6], (D, D), jnp.float32) * 0.1,
        "bo": jax.random.normal(k[7], (1, D), jnp.float32) * 0.1,
        "ln_g": jnp.ones((1, D), jnp.float32),
        "ln_b": jnp.zeros((1, D), jnp.float32),
    }

    hidden_states = jax.random.normal(k[8], (B, Tq, D), jnp.float32)
    ctx_tensor    = jax.random.normal(k[9], (B, Tk, D), jnp.float32)

    # BERT-style extended additive mask: 0 for valid keys, -10000 for padding
    ctx_lens = jnp.asarray([Tk, 5], jnp.int32)
    valid = (jnp.arange(Tk)[None, :] < ctx_lens[:, None]).astype(jnp.float32)
    ctx_att_mask = (1.0 - valid) * -10000.0                     # (B, Tk)

    out, scores = bert_xattention_pallas(
        params, hidden_states, ctx_tensor, ctx_att_mask,
        num_heads=nH, layer_norm_eps=eps)
    out = jax.block_until_ready(out)
    scores = jax.block_until_ready(scores)

    ref_out, ref_scores = _ref_xattn(params, hidden_states, ctx_tensor,
                                     ctx_att_mask, num_heads=nH, eps=eps)
    # bf16 MXU operands + approx reciprocal -> compare with relaxed tolerances
    np.testing.assert_allclose(np.asarray(out), np.asarray(ref_out),
                               rtol=2e-2, atol=2e-2)
    np.testing.assert_allclose(np.asarray(scores), np.asarray(ref_scores),
                               rtol=2e-2, atol=2e-2)

    print("KERNEL_OK")
</pallas_src>

<mosaic_0001>
module attributes {stable_mosaic.version = 11 : i64} {
  func.func @_bert_xattn_kernel(%arg0: i32, %arg1: i32, %arg2: memref<1x8x32xf32, #tpu.memory_space<vmem>>, %arg3: memref<1x8x32xbf16, #tpu.memory_space<vmem>>, %arg4: memref<1x1x8xf32, #tpu.memory_space<vmem>>, %arg5: memref<1x32x16xbf16, #tpu.memory_space<vmem>>, %arg6: memref<1x1x16xf32, #tpu.memory_space<vmem>>, %arg7: memref<1x32x16xbf16, #tpu.memory_space<vmem>>, %arg8: memref<1x1x16xf32, #tpu.memory_space<vmem>>, %arg9: memref<1x32x16xbf16, #tpu.memory_space<vmem>>, %arg10: memref<1x1x16xf32, #tpu.memory_space<vmem>>, %arg11: memref<1x16x32xbf16, #tpu.memory_space<vmem>>, %arg12: memref<1x32xf32, #tpu.memory_space<vmem>>, %arg13: memref<1x32xf32, #tpu.memory_space<vmem>>, %arg14: memref<1x32xf32, #tpu.memory_space<vmem>>, %arg15: memref<1x8x32xf32, #tpu.memory_space<vmem>>, %arg16: memref<1x1x8x8xf32, #tpu.memory_space<vmem>>, %arg17: memref<8x32xf32, #tpu.memory_space<vmem>>, %arg18: memref<8x32xbf16, #tpu.memory_space<vmem>>) attributes {dimension_semantics = [#tpu.dimension_semantics<parallel>, #tpu.dimension_semantics<arbitrary>], iteration_bounds = array<i64: 2, 2>, scalar_prefetch = 0 : i64, scratch_operands = 2 : i64, tpu.core_type = #tpu.core_type<tc>, window_params = [{transform_indices = @transform_0, window_bounds = array<i64: 1, 8, 32>}, {transform_indices = @transform_1, window_bounds = array<i64: 1, 8, 32>}, {transform_indices = @transform_2, window_bounds = array<i64: 1, 1, 8>}, {transform_indices = @transform_3, window_bounds = array<i64: 1, 32, 16>}, {transform_indices = @transform_4, window_bounds = array<i64: 1, 1, 16>}, {transform_indices = @transform_5, window_bounds = array<i64: 1, 32, 16>}, {transform_indices = @transform_6, window_bounds = array<i64: 1, 1, 16>}, {transform_indices = @transform_7, window_bounds = array<i64: 1, 32, 16>}, {transform_indices = @transform_8, window_bounds = array<i64: 1, 1, 16>}, {transform_indices = @transform_9, window_bounds = array<i64: 1, 16, 32>}, {pipeline_mode = #tpu.pipeline_mode<synchronous>, transform_indices = @transform_10, window_bounds = array<i64: 1, 32>}, {pipeline_mode = #tpu.pipeline_mode<synchronous>, transform_indices = @transform_11, window_bounds = array<i64: 1, 32>}, {pipeline_mode = #tpu.pipeline_mode<synchronous>, transform_indices = @transform_12, window_bounds = array<i64: 1, 32>}, {transform_indices = @transform_13, window_bounds = array<i64: 1, 8, 32>}, {transform_indices = @transform_14, window_bounds = array<i64: 1, 1, 8, 8>}]} {
    %c0_i32 = arith.constant 0 : i32
    %0 = arith.cmpi eq, %arg1, %c0_i32 : i32
    %1 = arith.extui %0 : i1 to i32
    %c0_i32_0 = arith.constant 0 : i32
    %2 = arith.cmpi ne, %1, %c0_i32_0 : i32
    scf.if %2 {
      %cst_48 = arith.constant 0.000000e+00 : f32
      %62 = vector.broadcast %cst_48 : f32 to vector<8x32xf32>
      %c0_49 = arith.constant 0 : index
      %c0_50 = arith.constant 0 : index
      %63 = vector.load %arg17[%c0_49, %c0_50] : memref<8x32xf32, #tpu.memory_space<vmem>>, vector<8x32xf32>
      tpu.vector_store %arg17[%c0_49, %c0_50], %62 {strides = array<i32>} : memref<8x32xf32, #tpu.memory_space<vmem>>, vector<8x32xf32>,
      %c0_51 = arith.constant 0 : index
      %c0_52 = arith.constant 0 : index
      %c0_53 = arith.constant 0 : index
      %64 = vector.load %arg2[%c0_51, %c0_52, %c0_53] : memref<1x8x32xf32, #tpu.memory_space<vmem>>, vector<1x8x32xf32>
      %65 = vector.shape_cast %64 : vector<1x8x32xf32> to vector<8x32xf32>
      %66 = arith.truncf %65 : vector<8x32xf32> to vector<8x32xbf16>
      %c0_54 = arith.constant 0 : index
      %c0_55 = arith.constant 0 : index
      %67 = vector.load %arg18[%c0_54, %c0_55] : memref<8x32xbf16, #tpu.memory_space<vmem>>, vector<8x32xbf16>
      tpu.vector_store %arg18[%c0_54, %c0_55], %66 {strides = array<i32>} : memref<8x32xbf16, #tpu.memory_space<vmem>>, vector<8x32xbf16>,
    } else {
    }
    %c0 = arith.constant 0 : index
    %c0_1 = arith.constant 0 : index
    %3 = vector.load %arg18[%c0, %c0_1] : memref<8x32xbf16, #tpu.memory_space<vmem>>, vector<8x32xbf16>
    %c0_2 = arith.constant 0 : index
    %c0_3 = arith.constant 0 : index
    %c0_4 = arith.constant 0 : index
    %4 = vector.load %arg5[%c0_2, %c0_3, %c0_4] : memref<1x32x16xbf16, #tpu.memory_space<vmem>>, vector<1x32x16xbf16>
    %5 = vector.shape_cast %4 : vector<1x32x16xbf16> to vector<32x16xbf16>
    %cst = arith.constant dense<0.000000e+00> : vector<8x16xf32>
    %6 = tpu.matmul %3, %5, %cst {dimension_numbers = #tpu.dot_dimension_numbers<[1], [0], [0], [1], [0, 0, 1, 1], [], []>} : vector<8x32xbf16>, vector<32x16xbf16>, vector<8x16xf32> -> vector<8x16xf32>
    %c0_5 = arith.constant 0 : index
    %c0_6 = arith.constant 0 : index
    %c0_7 = arith.constant 0 : index
    %7 = vector.load %arg6[%c0_5, %c0_6, %c0_7] : memref<1x1x16xf32, #tpu.memory_space<vmem>>, vector<1x1x16xf32>
    %8 = vector.shape_cast %7 : vector<1x1x16xf32> to vector<1x16xf32>
    %9 = vector.broadcast %8 : vector<1x16xf32> to vector<8x16xf32>
    %10 = arith.addf %6, %9 : vector<8x16xf32>
    %c0_8 = arith.constant 0 : index
    %c0_9 = arith.constant 0 : index
    %c0_10 = arith.constant 0 : index
    %11 = vector.load %arg3[%c0_8, %c0_9, %c0_10] : memref<1x8x32xbf16, #tpu.memory_space<vmem>>, vector<1x8x32xbf16>
    %12 = vector.shape_cast %11 : vector<1x8x32xbf16> to vector<8x32xbf16>
    %c0_11 = arith.constant 0 : index
    %c0_12 = arith.constant 0 : index
    %c0_13 = arith.constant 0 : index
    %13 = vector.load %arg7[%c0_11, %c0_12, %c0_13] : memref<1x32x16xbf16, #tpu.memory_space<vmem>>, vector<1x32x16xbf16>
    %14 = vector.shape_cast %13 : vector<1x32x16xbf16> to vector<32x16xbf16>
    %cst_14 = arith.constant dense<0.000000e+00> : vector<8x16xf32>
    %15 = tpu.matmul %12, %14, %cst_14 {dimension_numbers = #tpu.dot_dimension_numbers<[1], [0], [0], [1], [0, 0, 1, 1], [], []>} : vector<8x32xbf16>, vector<32x16xbf16>, vector<8x16xf32> -> vector<8x16xf32>
    %c0_15 = arith.constant 0 : index
    %c0_16 = arith.constant 0 : index
    %c0_17 = arith.constant 0 : index
    %16 = vector.load %arg8[%c0_15, %c0_16, %c0_17] : memref<1x1x16xf32, #tpu.memory_space<vmem>>, vector<1x1x16xf32>
    %17 = vector.shape_cast %16 : vector<1x1x16xf32> to vector<1x16xf32>
    %18 = vector.broadcast %17 : vector<1x16xf32> to vector<8x16xf32>
    %19 = arith.addf %15, %18 : vector<8x16xf32>
    %c0_18 = arith.constant 0 : index
    %c0_19 = arith.constant 0 : index
    %c0_20 = arith.constant 0 : index
    %20 = vector.load %arg3[%c0_18, %c0_19, %c0_20] : memref<1x8x32xbf16, #tpu.memory_space<vmem>>, vector<1x8x32xbf16>
    %21 = vector.shape_cast %20 : vector<1x8x32xbf16> to vector<8x32xbf16>
    %c0_21 = arith.constant 0 : index
    %c0_22 = arith.constant 0 : index
    %c0_23 = arith.constant 0 : index
    %22 = vector.load %arg9[%c0_21, %c0_22, %c0_23] : memref<1x32x16xbf16, #tpu.memory_space<vmem>>, vector<1x32x16xbf16>
    %23 = vector.shape_cast %22 : vector<1x32x16xbf16> to vector<32x16xbf16>
    %cst_24 = arith.constant dense<0.000000e+00> : vector<8x16xf32>
    %24 = tpu.matmul %21, %23, %cst_24 {dimension_numbers = #tpu.dot_dimension_numbers<[1], [0], [0], [1], [0, 0, 1, 1], [], []>} : vector<8x32xbf16>, vector<32x16xbf16>, vector<8x16xf32> -> vector<8x16xf32>
    %c0_25 = arith.constant 0 : index
    %c0_26 = arith.constant 0 : index
    %c0_27 = arith.constant 0 : index
    %25 = vector.load %arg10[%c0_25, %c0_26, %c0_27] : memref<1x1x16xf32, #tpu.memory_space<vmem>>, vector<1x1x16xf32>
    %26 = vector.shape_cast %25 : vector<1x1x16xf32> to vector<1x16xf32>
    %27 = vector.broadcast %26 : vector<1x16xf32> to vector<8x16xf32>
    %28 = arith.addf %24, %27 : vector<8x16xf32>
    %29 = arith.truncf %10 : vector<8x16xf32> to vector<8x16xbf16>
    %30 = arith.truncf %19 : vector<8x16xf32> to vector<8x16xbf16>
    %31 = arith.truncf %28 : vector<8x16xf32> to vector<8x16xbf16>
    %cst_28 = arith.constant dense<0.000000e+00> : vector<8x8xf32>
    %32 = tpu.matmul %29, %30, %cst_28 {dimension_numbers = #tpu.dot_dimension_numbers<[1], [1], [0], [0], [0, 0, 1, 0], [], []>} : vector<8x16xbf16>, vector<8x16xbf16>, vector<8x8xf32> -> vector<8x8xf32>
    %c0_29 = arith.constant 0 : index
    %c0_30 = arith.constant 0 : index
    %c0_31 = arith.constant 0 : index
    %33 = vector.load %arg4[%c0_29, %c0_30, %c0_31] : memref<1x1x8xf32, #tpu.memory_space<vmem>>, vector<1x1x8xf32>
    %34 = vector.shape_cast %33 : vector<1x1x8xf32> to vector<1x8xf32>
    %35 = vector.broadcast %34 : vector<1x8xf32> to vector<8x8xf32>
    %36 = arith.addf %32, %35 : vector<8x8xf32>
    %c0_32 = arith.constant 0 : index
    %c0_33 = arith.constant 0 : index
    %c0_34 = arith.constant 0 : index
    %c0_35 = arith.constant 0 : index
    %37 = vector.load %arg16[%c0_32, %c0_33, %c0_34, %c0_35] : memref<1x1x8x8xf32, #tpu.memory_space<vmem>>, vector<1x1x8x8xf32>
    %38 = vector.shape_cast %37 : vector<1x1x8x8xf32> to vector<8x8xf32>
    %39 = vector.shape_cast %36 : vector<8x8xf32> to vector<1x1x8x8xf32>
    tpu.vector_store %arg16[%c0_32, %c0_33, %c0_34, %c0_35], %39 {strides = array<i32>} : memref<1x1x8x8xf32, #tpu.memory_space<vmem>>, vector<1x1x8x8xf32>,
    %cst_36 = arith.constant dense<0xFF800000> : vector<8xf32>
    %40 = vector.multi_reduction <maximumf>, %36, %cst_36 [1] : vector<8x8xf32> to vector<8xf32>
    %41 = vector.shape_cast %40 : vector<8xf32> to vector<8x1xf32>
    %42 = vector.broadcast %41 : vector<8x1xf32> to vector<8x8xf32>
    %43 = arith.subf %36, %42 : vector<8x8xf32>
    %44 = math.exp %43 : vector<8x8xf32>
    %cst_37 = arith.constant dense<0.000000e+00> : vector<8xf32>
    %45 = vector.multi_reduction <add>, %44, %cst_37 [1] : vector<8x8xf32> to vector<8xf32>
    %46 = vector.shape_cast %45 : vector<8xf32> to vector<8x1xf32>
    %47 = tpu.reciprocal %46 {approx = true} : vector<8x1xf32> -> vector<8x1xf32>
    %48 = vector.broadcast %47 : vector<8x1xf32> to vector<8x8xf32>
    %49 = arith.mulf %44, %48 : vector<8x8xf32>
    %50 = arith.truncf %49 : vector<8x8xf32> to vector<8x8xbf16>
    %cst_38 = arith.constant dense<0.000000e+00> : vector<8x16xf32>
    %51 = tpu.matmul %50, %31, %cst_38 {dimension_numbers = #tpu.dot_dimension_numbers<[1], [0], [0], [1], [0, 0, 1, 1], [], []>} : vector<8x8xbf16>, vector<8x16xbf16>, vector<8x16xf32> -> vector<8x16xf32>
    %52 = arith.truncf %51 : vector<8x16xf32> to vector<8x16xbf16>
    %c0_39 = arith.constant 0 : index
    %c0_40 = arith.constant 0 : index
    %53 = vector.load %arg17[%c0_39, %c0_40] : memref<8x32xf32, #tpu.memory_space<vmem>>, vector<8x32xf32>
    %c0_41 = arith.constant 0 : index
    %c0_42 = arith.constant 0 : index
    %c0_43 = arith.constant 0 : index
    %54 = vector.load %arg11[%c0_41, %c0_42, %c0_43] : memref<1x16x32xbf16, #tpu.memory_space<vmem>>, vector<1x16x32xbf16>
    %55 = vector.shape_cast %54 : vector<1x16x32xbf16> to vector<16x32xbf16>
    %cst_44 = arith.constant dense<0.000000e+00> : vector<8x32xf32>
    %56 = tpu.matmul %52, %55, %cst_44 {dimension_numbers = #tpu.dot_dimension_numbers<[1], [0], [0], [1], [0, 0, 1, 1], [], []>} : vector<8x16xbf16>, vector<16x32xbf16>, vector<8x32xf32> -> vector<8x32xf32>
    %57 = arith.addf %53, %56 : vector<8x32xf32>
    %c0_45 = arith.constant 0 : index
    %c0_46 = arith.constant 0 : index
    %58 = vector.load %arg17[%c0_45, %c0_46] : memref<8x32xf32, #tpu.memory_space<vmem>>, vector<8x32xf32>
    tpu.vector_store %arg17[%c0_45, %c0_46], %57 {strides = array<i32>} : memref<8x32xf32, #tpu.memory_space<vmem>>, vector<8x32xf32>,
    %c1_i32 = arith.constant 1 : i32
    %59 = arith.cmpi eq, %arg1, %c1_i32 : i32
    %60 = arith.extui %59 : i1 to i32
    %c0_i32_47 = arith.constant 0 : i32
    %61 = arith.cmpi ne, %60, %c0_i32_47 : i32
    scf.if %61 {
      %c0_48 = arith.constant 0 : index
      %c0_49 = arith.constant 0 : index
      %62 = vector.load %arg17[%c0_48, %c0_49] : memref<8x32xf32, #tpu.memory_space<vmem>>, vector<8x32xf32>
      %c0_50 = arith.constant 0 : index
      %c0_51 = arith.constant 0 : index
      %63 = vector.load %arg12[%c0_50, %c0_51] : memref<1x32xf32, #tpu.memory_space<vmem>>, vector<1x32xf32>
      %64 = vector.broadcast %63 : vector<1x32xf32> to vector<8x32xf32>
      %65 = arith.addf %62, %64 : vector<8x32xf32>
      %c0_52 = arith.constant 0 : index
      %c0_53 = arith.constant 0 : index
      %c0_54 = arith.constant 0 : index
      %66 = vector.load %arg2[%c0_52, %c0_53, %c0_54] : memref<1x8x32xf32, #tpu.memory_space<vmem>>, vector<1x8x32xf32>
      %67 = vector.shape_cast %66 : vector<1x8x32xf32> to vector<8x32xf32>
      %68 = arith.addf %65, %67 : vector<8x32xf32>
      %cst_55 = arith.constant dense<0.000000e+00> : vector<8xf32>
      %69 = vector.multi_reduction <add>, %68, %cst_55 [1] : vector<8x32xf32> to vector<8xf32>
      %70 = vector.shape_cast %69 : vector<8xf32> to vector<8x1xf32>
      %cst_56 = arith.constant 3.200000e+01 : f32
      %71 = vector.broadcast %cst_56 : f32 to vector<8x1xf32>
      %72 = arith.divf %70, %71 : vector<8x1xf32>
      %73 = vector.broadcast %72 : vector<8x1xf32> to vector<8x32xf32>
      %74 = arith.subf %68, %73 : vector<8x32xf32>
      %75 = arith.mulf %74, %74 : vector<8x32xf32>
      %cst_57 = arith.constant dense<0.000000e+00> : vector<8xf32>
      %76 = vector.multi_reduction <add>, %75, %cst_57 [1] : vector<8x32xf32> to vector<8xf32>
      %77 = vector.shape_cast %76 : vector<8xf32> to vector<8x1xf32>
      %cst_58 = arith.constant 3.200000e+01 : f32
      %78 = vector.broadcast %cst_58 : f32 to vector<8x1xf32>
      %79 = arith.divf %77, %78 : vector<8x1xf32>
      %cst_59 = arith.constant 9.99999996E-13 : f32
      %80 = vector.broadcast %cst_59 : f32 to vector<8x1xf32>
      %81 = arith.addf %79, %80 : vector<8x1xf32>
      %82 = math.rsqrt %81 : vector<8x1xf32>
      %83 = vector.broadcast %82 : vector<8x1xf32> to vector<8x32xf32>
      %84 = arith.mulf %74, %83 : vector<8x32xf32>
      %c0_60 = arith.constant 0 : index
      %c0_61 = arith.constant 0 : index
      %85 = vector.load %arg13[%c0_60, %c0_61] : memref<1x32xf32, #tpu.memory_space<vmem>>, vector<1x32xf32>
      %86 = vector.broadcast %85 : vector<1x32xf32> to vector<8x32xf32>
      %87 = arith.mulf %86, %84 : vector<8x32xf32>
      %c0_62 = arith.constant 0 : index
      %c0_63 = arith.constant 0 : index
      %88 = vector.load %arg14[%c0_62, %c0_63] : memref<1x32xf32, #tpu.memory_space<vmem>>, vector<1x32xf32>
      %89 = vector.broadcast %88 : vector<1x32xf32> to vector<8x32xf32>
      %90 = arith.addf %87, %89 : vector<8x32xf32>
      %c0_64 = arith.constant 0 : index
      %c0_65 = arith.constant 0 : index
      %c0_66 = arith.constant 0 : index
      %91 = vector.load %arg15[%c0_64, %c0_65, %c0_66] : memref<1x8x32xf32, #tpu.memory_space<vmem>>, vector<1x8x32xf32>
      %92 = vector.shape_cast %91 : vector<1x8x32xf32> to vector<8x32xf32>
      %93 = vector.shape_cast %90 : vector<8x32xf32> to vector<1x8x32xf32>
      tpu.vector_store %arg15[%c0_64, %c0_65, %c0_66], %93 {strides = array<i32>} : memref<1x8x32xf32, #tpu.memory_space<vmem>>, vector<1x8x32xf32>,
    } else {
    }
    return
  }
  func.func @transform_0(%arg0: i32, %arg1: i32) -> (i32, i32, i32) {
    %c0_i32 = arith.constant 0 : i32
    %c0_i32_0 = arith.constant 0 : i32
    %c0_i32_1 = arith.constant 0 : i32
    return %arg0, %c0_i32, %c0_i32_0 : i32, i32, i32
  }
  func.func @transform_1(%arg0: i32, %arg1: i32) -> (i32, i32, i32) {
    %c0_i32 = arith.constant 0 : i32
    %c0_i32_0 = arith.constant 0 : i32
    %c0_i32_1 = arith.constant 0 : i32
    return %arg0, %c0_i32, %c0_i32_0 : i32, i32, i32
  }
  func.func @transform_2(%arg0: i32, %arg1: i32) -> (i32, i32, i32) {
    %c0_i32 = arith.constant 0 : i32
    %c0_i32_0 = arith.constant 0 : i32
    %c0_i32_1 = arith.constant 0 : i32
    return %arg0, %c0_i32, %c0_i32_0 : i32, i32, i32
  }
  func.func @transform_3(%arg0: i32, %arg1: i32) -> (i32, i32, i32) {
    %c0_i32 = arith.constant 0 : i32
    %c0_i32_0 = arith.constant 0 : i32
    %c0_i32_1 = arith.constant 0 : i32
    return %arg1, %c0_i32, %c0_i32_0 : i32, i32, i32
  }
  func.func @transform_4(%arg0: i32, %arg1: i32) -> (i32, i32, i32) {
    %c0_i32 = arith.constant 0 : i32
    %c0_i32_0 = arith.constant 0 : i32
    %c0_i32_1 = arith.constant 0 : i32
    return %arg1, %c0_i32, %c0_i32_0 : i32, i32, i32
  }
  func.func @transform_5(%arg0: i32, %arg1: i32) -> (i32, i32, i32) {
    %c0_i32 = arith.constant 0 : i32
    %c0_i32_0 = arith.constant 0 : i32
    %c0_i32_1 = arith.constant 0 : i32
    return %arg1, %c0_i32, %c0_i32_0 : i32, i32, i32
  }
  func.func @transform_6(%arg0: i32, %arg1: i32) -> (i32, i32, i32) {
    %c0_i32 = arith.constant 0 : i32
    %c0_i32_0 = arith.constant 0 : i32
    %c0_i32_1 = arith.constant 0 : i32
    return %arg1, %c0_i32, %c0_i32_0 : i32, i32, i32
  }
  func.func @transform_7(%arg0: i32, %arg1: i32) -> (i32, i32, i32) {
    %c0_i32 = arith.constant 0 : i32
    %c0_i32_0 = arith.constant 0 : i32
    %c0_i32_1 = arith.constant 0 : i32
    return %arg1, %c0_i32, %c0_i32_0 : i32, i32, i32
  }
  func.func @transform_8(%arg0: i32, %arg1: i32) -> (i32, i32, i32) {
    %c0_i32 = arith.constant 0 : i32
    %c0_i32_0 = arith.constant 0 : i32
    %c0_i32_1 = arith.constant 0 : i32
    return %arg1, %c0_i32, %c0_i32_0 : i32, i32, i32
  }
  func.func @transform_9(%arg0: i32, %arg1: i32) -> (i32, i32, i32) {
    %c0_i32 = arith.constant 0 : i32
    %c0_i32_0 = arith.constant 0 : i32
    %c0_i32_1 = arith.constant 0 : i32
    return %arg1, %c0_i32, %c0_i32_0 : i32, i32, i32
  }
  func.func @transform_10(%arg0: i32, %arg1: i32) -> (i32, i32) {
    %c0_i32 = arith.constant 0 : i32
    %c0_i32_0 = arith.constant 0 : i32
    %c0_i32_1 = arith.constant 0 : i32
    return %c0_i32, %c0_i32_0 : i32, i32
  }
  func.func @transform_11(%arg0: i32, %arg1: i32) -> (i32, i32) {
    %c0_i32 = arith.constant 0 : i32
    %c0_i32_0 = arith.constant 0 : i32
    %c0_i32_1 = arith.constant 0 : i32
    return %c0_i32, %c0_i32_0 : i32, i32
  }
  func.func @transform_12(%arg0: i32, %arg1: i32) -> (i32, i32) {
    %c0_i32 = arith.constant 0 : i32
    %c0_i32_0 = arith.constant 0 : i32
    %c0_i32_1 = arith.constant 0 : i32
    return %c0_i32, %c0_i32_0 : i32, i32
  }
  func.func @transform_13(%arg0: i32, %arg1: i32) -> (i32, i32, i32) {
    %c0_i32 = arith.constant 0 : i32
    %c0_i32_0 = arith.constant 0 : i32
    %c0_i32_1 = arith.constant 0 : i32
    return %arg0, %c0_i32, %c0_i32_0 : i32, i32, i32
  }
  func.func @transform_14(%arg0: i32, %arg1: i32) -> (i32, i32, i32, i32) {
    %c0_i32 = arith.constant 0 : i32
    %c0_i32_0 = arith.constant 0 : i32
    %c0_i32_1 = arith.constant 0 : i32
    return %arg0, %arg1, %c0_i32, %c0_i32_0 : i32, i32, i32, i32
  }
}

</mosaic_0001>

<bundles_post_ra>
// kernel: tpu_custom_call.1
= control target key start
LH: loop header
LB: loop body
LE: loop exit
PB: predicated region body
PF: predicated region fallthrough
CT: control target
= control target key end

     0   :  { %s2084_s0 = inlined_call_operand.vmem [shape: f32[2,8,32], index: 0, kind: input, shape index: {}]   ;;  %s2085_s1 = inlined_call_operand.vmem [shape: bf16[2,8,32], index: 1, kind: input, shape index: {}]   ;;  %s2086_s2 = inlined_call_operand.vmem [shape: f32[2,1,8], index: 2, kind: input, shape index: {}]   ;;  %s2087_s3 = inlined_call_operand.vmem [shape: bf16[2,32,16], index: 3, kind: input, shape index: {}]   ;;  %s2088_s4 = inlined_call_operand.vmem [shape: f32[2,1,16], index: 4, kind: input, shape index: {}]   ;;  %s2089_s5 = inlined_call_operand.vmem [shape: bf16[2,32,16], index: 5, kind: input, shape index: {}]   ;;  %s2090_s6 = inlined_call_operand.vmem [shape: f32[2,1,16], index: 6, kind: input, shape index: {}]   ;;  %s2091_s7 = inlined_call_operand.vmem [shape: bf16[2,32,16], index: 7, kind: input, shape index: {}]   ;;  %s2092_s8 = inlined_call_operand.vmem [shape: f32[2,1,16], index: 8, kind: input, shape index: {}]   ;;  %s2093_s9 = inlined_call_operand.vmem [shape: bf16[2,16,32], index: 9, kind: input, shape index: {}]   ;;  %s2094_s10 = inlined_call_operand.vmem [shape: f32[1,32], index: 10, kind: input, shape index: {}]   ;;  %s2095_s11 = inlined_call_operand.vmem [shape: f32[1,32], index: 11, kind: input, shape index: {}]   ;;  %s2096_s12 = inlined_call_operand.vmem [shape: f32[1,32], index: 12, kind: input, shape index: {}]   ;;  %s2097_s13 = inlined_call_operand.hbm [shape: f32[2,8,32], index: 13, kind: output, shape index: {0}]   ;;  %s2098_s14 = inlined_call_operand.hbm [shape: f32[2,2,8,8], index: 14, kind: output, shape index: {1}]  }
   0x1   :  { %2123 = sst [smem:[#allocation28_spill]] %s2084_s0 }
   0x2   :  { %2124 = sst [smem:[#allocation29_spill]] %s2085_s1 }
   0x3   :  { %2125 = sst [smem:[#allocation30_spill]] %s2086_s2 }
   0x4   :  { %2126 = sst [smem:[#allocation31_spill]] %s2087_s3 }
   0x5   :  { %2127 = sst [smem:[#allocation32_spill]] %s2093_s9 }
   0x6   :  { %2128 = sst [smem:[#allocation33_spill]] %s2094_s10 }
   0x7   :  { %2129 = sst [smem:[#allocation34_spill]] %s2095_s11 }
   0x8   :  { %2130 = sst [smem:[#allocation35_spill]] %s2096_s12 }
   0x9   :  { %2131 = sst [smem:[#allocation36_spill]] %s2097_s13 }
   0xa   :  { %2132 = sst [smem:[#allocation37_spill]] %s2098_s14 }
   0xb   :  { %20 = vsyncpa [#allocation5], 0 }
   0xc   :  { %22 = vsyncpa [#allocation5 + $0x1], 0 }
   0xd   :  { %23 = vsyncpa [#allocation7], 0 }
   0xe   :  { %25 = vsyncpa [#allocation7 + $0x1], 0  ;;  %s1754_s29 = smov 0   ;;  %s1756_s30 = smov 0  }
   0xf   :  { %s1758_s15 = smov 0   ;;  %s1760_s16 = smov 0  }
  0x10   :  { %s1762_s17 = smov 0   ;;  %s1764_s18 = smov 0  }
  0x11   :  { %s1766_s19 = smov 0   ;;  %s1768_s20 = smov 0  }
  0x12   :  { %s1770_s21 = smov 0   ;;  %s1772_s22 = smov 0  }
  0x13   :  { %s1774_s23 = smov 0  }
  0x14 LB: > { %2133 = sst [smem:[#allocation10_spill]] %s1632_s29  ;;  %s1303_s24 = sadd.s32 4294967295, %s1672_s23   ;;  %s1672_s23 = sphi %s1774_s23, %s31_s23   ;;  %s1668_s22 = sphi %s1772_s22, %s2193_s22   ;;  %s1664_s21 = sphi %s1770_s21, %s2192_s21   ;;  %s1660_s20 = sphi %s1768_s20, %s2191_s20   ;;  %s1656_s19 = sphi %s1766_s19, %s2190_s19   ;;  %s1652_s18 = sphi %s1764_s18, %s2189_s18   ;;  %s1648_s17 = sphi %s1762_s17, %s2188_s17   ;;  %s1644_s16 = sphi %s1760_s16, %s2187_s16   ;;  %s1640_s15 = sphi %s1758_s15, %s2186_s15   ;;  %s1636_s30 = sphi %s1756_s30, %s2185_s30   ;;  %s1632_s29 = sphi %s1754_s29, %s2184_s29  }
  0x15   : > { %2134 = sst [smem:[#allocation11_spill]] %s1636_s30  ;;  %s1304_s25 = sadd.s32 4294967294, %s1672_s23  }
  0x16   : > { %2135 = sst [smem:[#allocation12_spill]] %s1640_s15  ;;  %s40_s26 = sadd.s32 1, %s1664_s21 }
  0x17   : > { %2136 = sst [smem:[#allocation13_spill]] %s1644_s16  ;;  %s43_s27 = sadd.s32 1, %s1668_s22 }
  0x18   : > { %2137 = sst [smem:[#allocation14_spill]] %s1648_s17  ;;  %p41_p0 = scmp.ge.s32.totalorder %s40_s26, 2 }
  0x19   : > { %2138 = sst [smem:[#allocation15_spill]] %s1652_s18  ;;  %s373_s28 = sadd.s32 1, %s1652_s18 }
  0x1a   : > { %2139 = sst [smem:[#allocation16_spill]] %s1660_s20  ;;  %p383_p1 = scmp.ne.s32.totalorder %s1652_s18, %s1648_s17 }
  0x1b   : > { %2140 = sst [smem:[#allocation17_spill]] %s1664_s21  ;;  %p1816_p2 = scmp.eq.s32.totalorder %s1303_s24, 3 }
  0x1c   : > { %2141 = sst [smem:[#allocation18_spill]] %s1668_s22  ;;  %s2195_s26 = smov (%p41_p0, %s40_s26), 0 }
  0x1d   : > { %2142 = sst [smem:[#allocation19_spill]] %s1672_s23  ;;  %s2197_s27 = smov (!%p41_p0, %s43_s27), %s1668_s22 }
  0x1e   : > { %2144 = sst [smem:[#allocation20_spill]] %s2195_s26  ;;  %p1825_p3 = por %p1816_p2, %p383_p1 }
  0x1f   : > { %p389_p4 = scmp.ne.s32.totalorder %s1648_s17, %s1644_s16  ;;  %p45_p5 = scmp.ge.s32.totalorder %s2197_s27, 2 }
  0x20   : > { %s2145_s13 = scalar_select %p1825_p3, 1, 0 }
  0x21   : > { %p1831_p6 = scmp.eq.s32.totalorder %s1304_s25, 3  ;;  %s397_s12 = ssub.s32 %s1664_s21, %s2195_s26 }
  0x22   : > { %2146 = sst [smem:[#allocation21_spill]] %s2145_s13  ;;  %s401_s11 = sadd.s32 1, %s1640_s15 }
  0x23   : > { %s2199_s27 = smov (%p45_p5, %s2197_s27), 0  ;;  %p1842_p7 = por %p1831_p6, %p389_p4 }
  0x24   : > { %2148 = sst [smem:[#allocation22_spill]] %s2199_s27  ;;  %p411_p8 = scmp.ne.s32.totalorder %s1640_s15, %s1636_s30 }
  0x25   : > { %s2149_s10 = scalar_select %p1842_p7, 1, 0 }
  0x26   : > { %s370_s16 = ssub.s32 %s1668_s22, %s2199_s27  ;;  %p417_p9 = scmp.ne.s32.totalorder %s1636_s30, %s1632_s29 }
  0x27   : > { %2150 = sst [smem:[#allocation23_spill]] %s2149_s10  ;;  %p371_p10 = scmp.eq.s32.totalorder %s370_s16, 0 }
  0x28   : > { %s398_s25 = sor.u32 %s397_s12, %s370_s16  ;;  %p1854_p12 = por %p411_p8, %p1816_p2 }
  0x29   : > { %p399_p11 = scmp.eq.s32.totalorder %s398_s25, 0  ;;  %p1866_p13 = por %p417_p9, %p1831_p6 }
  0x2a   : > { %s2151_s13 = scalar_select %p1854_p12, 1, 0 }
  0x2b   : > { %s1859_s26 = scalar_select %p371_p10, %s1652_s18, %s373_s28  }
  0x2c   : > { %2152 = sst [smem:[#allocation24_spill]] %s2151_s13  ;;  %p1307_p0 = scmp.ge.s32.totalorder %s1672_s23, 1 }
  0x2d   : > { %2153 = sst [smem:[#allocation25_spill]] %s1859_s26  ;;  %p515_p1 = scmp.lt.s32.totalorder %s1672_s23, 5 }
  0x2e   : > { %s1862_s21 = scalar_select %p399_p11, %s1640_s15, %s401_s11  }
  0x2f   : > { %s2155_s9 = scalar_select %p1866_p13, 1, 0 }
  0x30   : > { %2154 = sst [smem:[#allocation26_spill]] %s1862_s21  ;;  %p516_p4 = pnand %p1307_p0, %p515_p1 }
  0x31   : > { %2156 = sst [smem:[#allocation27_spill]] %s2155_s9  ;;  %s2106_s12 = sand.u32 (!%p516_p4), 1, %s1648_s17  }
  0x32   : > { %519 = sbr.rel (%p516_p4) target bundleno = 1558 (0x616), region = 72  ;;  %s2107_s11 = sand.u32 (!%p516_p4), 1, %s1636_s30  }
  0x33   : > { %s1876_s14 = sshll.u32 (!%p516_p4), %s2106_s12, 3  ;;  %s1880_s16 = sshll.u32 (!%p516_p4), %s2107_s11, 3 }
  0x34   : > { %p601_p2 = scmp.lt.s32.totalorder (!%p516_p4), %s1660_s20, 1  ;;  %p612_p5 = scmp.lt.s32.totalorder (!%p516_p4), %s1656_s19, 1 }
  0x35   : > { %s2157_s0 = sld [smem:[#allocation28_spill]] (!%p516_p4)  ;;  %s593_s11 = scalar_lea.vmem (!%p516_p4), [#allocation4], %s1876_s14 }
  0x36   : > { %s2158_s1 = sld [smem:[#allocation29_spill]] (!%p516_p4)  ;;  %p1320_p6 = scmp.ne.s32.totalorder (!%p516_p4), %s1656_s19, 0 }
  0x37   : > { %s1885_s28 = scalar_select %p601_p2, %s1660_s20, 1 }
  0x38   : > { %s1888_s24 = scalar_select %p612_p5, %s1656_s19, 1 }
  0x39   : > { %s1310_s25 = sshll.u32 %s1885_s28, 3  ;;  %s1311_s12 = sshll.u32 %s1885_s28, 2 }
  0x3a   : > { %s1349_s10 = sshll.u32 %s1888_s24, 4  ;;  %s2160_s3 = sld [smem:[#allocation31_spill]] }
  0x3b   : > { %s1895_s22 = scalar_lea.vmem %s2157_s0, %s1310_s25  ;;  %s624_s18 = scalar_lea.vmem %s2089_s5, %s1349_s10 }
  0x3c   : > { %s1900_s21 = scalar_lea.vmem %s2158_s1, %s1311_s12  ;;  %s627_s0 = scalar_lea.vmem %s2090_s6, %s1888_s24 }
  0x3d   : > { %s1926_s29 = scalar_lea.vmem %s2091_s7, %s1349_s10  ;;  %s635_s1 = scalar_lea.vmem %s2092_s8, %s1888_s24 }
  0x3e   : > { %s2161_s27 = sld [smem:[#allocation32_spill]]  ;;  %s600_s25 = scalar_lea.vmem [#allocation6], %s1880_s16 }
  0x40   : > { %s1910_s30 = scalar_lea.vmem %s2160_s3, %s1349_s10  ;;  %s1352_s3 = sshll.u32 %s1888_s24, 3 }
  0x41   : > { %645 = sbr.rel (%p1320_p6) target bundleno = 74 (0x4a), region = 76 }
  0x44   : > { %s1936_s2 = scalar_lea.vmem %s2161_s27, %s1352_s3 }
  0x46   : > { %vm646_vm0 = vcmask 261120   ;;  %v648_v0 = vld [vmem:[%s1895_s22] sm:$0xff]  ;;  %vm650_vm1 = vcmask 257024   ;;  %v1674_v1 = vmov 0.0  }
  0x47   : > { %647 = vst.msk [vmem:[#allocation2] sm:$0xff] %vm646_vm0, %v1674_v1  ;;  %v649_v2 = vpack.c.bf16 %v648_v0, %v648_v0 }
  0x49   : > { %651 = vst.msk [vmem:[#allocation3] sm:$0xf] %vm650_vm1, %v649_v2 }
  0x4a PF: > { %v1513_v3 = vld [vmem:[%s624_s18 + $0x8] sm:$0xff]   ;;  %v1675_v4 = vmov 0.0   ;;  %v1515_v6 = vld [vmem:[%s624_s18] sm:$0xff]   ;;  %vm1676_vm2 = vmmov 0   ;;  %vm676_vm3 = vcmask 261120   ;;  %vm860_vm4 = vcmask 130048   ;;  %s2162_s27 = scalar_lea.vmem %s2088_s4, %s1888_s24 }
  0x4b   : > { %1376 = vmatprep.subr.bf16.mxu1 %v1675_v4  ;;  %1368 = vmatprep.subr.bf16.mxu0 %v1675_v4  ;;  %v1514_v5 = vld [vmem:[%s1910_s30 + $0x8] sm:$0xff]   ;;  %v1516_v7 = vld [vmem:[%s1910_s30] sm:$0xff]   ;;  %s2163_s26 = sld [smem:[#allocation30_spill]]  ;;  %vm907_vm5 = vcmask 64512   ;;  %vm924_vm6 = vcmask 1043456   ;;  %p1338_p8 = scmp.ne.s32.totalorder %s1656_s19, 1 }
  0x4c   : > { %1377 = vmatpush3.bf16.msra.mxu1 %v1513_v3  ;;  %1380 = vmatprep.mubr.msk.bf16.mxu1 %vm1676_vm2, %v1675_v4  ;;  %v720_v8 = vld [vmem:[%s1900_s21] sm:$0xf]  ;;  %v1517_v25 = vld [vmem:[%s1926_s29 + $0x8] sm:$0xff]   ;;  %s2165_s24 = sld [smem:[#allocation33_spill]] (!%p1338_p8) }
  0x4d   : > { %1369 = vmatpush3.bf16.msra.mxu0 %v1514_v5  ;;  %1378 = vmatprep.subr.bf16.mxu1 %v1675_v4  ;;  %v1325_v10 = vld [vmem:[%s627_s0] ss:$0 sm:$0xff]  ;;  %s2166_s15 = sld [smem:[#allocation34_spill]] (!%p1338_p8) }
  0x4e   : > { %1370 = vmatprep.subr.bf16.mxu0 %v1675_v4  ;;  %1372 = vmatprep.mubr.msk.bf16.mxu0 %vm1676_vm2, %v1675_v4  ;;  %v1321_v15 = vld [vmem:[%s2162_s27] ss:$0 sm:$0xff]  ;;  %s2167_s17 = sld [smem:[#allocation35_spill]] (!%p1338_p8) }
  0x4f   : > { %v1518_v26 = vld [vmem:[%s1926_s29] sm:$0xff]  }
  0x50   : > { %1379 = vmatpush3.bf16.msra.mxu1 %v1515_v6  ;;  %v652_v9 = vld [vmem:[#allocation3] sm:$0xf]  ;;  %v1329_v39 = vld [vmem:[%s635_s1] ss:$0 sm:$0xff] }
  0x51   : > { %1371 = vmatpush3.bf16.msra.mxu0 %v1516_v7  ;;  %1392 = vmatprep.subr.bf16.mxu1 %v1675_v4  ;;  %s2164_s12 = scalar_lea.vmem %s2163_s26, %s1885_s28  ;;  %v1519_v47 = vld [vmem:[%s1936_s2] sm:$0xff]  }
  0x52   : > { %1384 = vmatprep.subr.bf16.mxu0 %v1675_v4  ;;  %v1333_v27 = vld [vmem:[%s2164_s12] ss:$0 sm:$0xff] }
  0x53   : > { %1381 = vmatmul.mubr.msk.bf16.vlgmr.msra.gmra.mxu1 %vm676_vm3, %v720_v8  ;;  %v969_v57 = vld [vmem:[#allocation2] sm:$0xff] }
  0x54   : > { %1373 = vmatmul.mubr.msk.bf16.vlgmr.msra.gmra.mxu0 %vm676_vm3, %v652_v9  ;;  %1394 = vmatprep.mubr.msk.bf16.mxu1 %vm1676_vm2, %v1675_v4 }
  0x55   : > { %1388 = vmatprep.mubr.msk.bf16.mxu0 %vm1676_vm2, %v1675_v4  ;;  %1385 = vmatpush3.bf16.msra.mxu0 %v1517_v25 }
  0x56   : > { %1386 = vmatprep.subr.bf16.mxu0 %v1675_v4 }
  0x59   : > { %1387 = vmatpush3.bf16.msra.mxu0 %v1518_v26 }
  0x5a   : > { %1398 = vmatprep.subr.bf16.mxu0 %v1675_v4 }
  0x5c   : > { %1389 = vmatmul.mubr.msk.bf16.vlgmr.msra.gmra.mxu0 %vm676_vm3, %v720_v8 }
  0x5d   : > { %1400 = vmatprep.mubr.msk.bf16.mxu0 %vm1676_vm2, %v1675_v4 }
 0x113   : > { %v781_v11 = vpop.f32.mrf.mxu1 }
 0x114   : > { %v782_v12 = vadd.f32 %v1325_v10, %v781_v11  ;;  %v714_v13 = vpop.f32.mrf.mxu0 }
 0x115   : > { %v1382_v14 = vpop.f32.mrf.mxu1  ;;  %v715_v20 = vadd.f32 %v1321_v15, %v714_v13 }
 0x116   : > { %v851_v16 = vpack.c.bf16 %v782_v12, %v782_v12  ;;  %v1374_v17 = vpop.f32.mrf.mxu0 }
 0x117   : > { %v784_v18 = vpop.f32.mrf.mxu1  ;;  %v850_v24 = vpack.c.bf16 %v715_v20, %v715_v20 }
 0x118   : > { %v865_v19 = vsel %vm860_vm4, %v851_v16, 0  ;;  %v717_v21 = vpop.f32.mrf.mxu0 }
 0x119   : > { %v1383_v22 = vpop.f32.mrf.mxu1  ;;  %1393 = vmatpush3.bf16.xpose.msra.mxu1 %v865_v19 }
 0x11a   : > { %v1375_v23 = vpop.f32.mrf.mxu0  ;;  %1404 = vmatprep.subr.bf16.mxu1 %v1675_v4 }
 0x11c   : > { %v844_v40 = vpop.f32.mrf.mxu0 }
 0x11d   : > { %v845_v41 = vadd.f32 %v1329_v39, %v844_v40 }
 0x11e   : > { %v1390_v42 = vpop.f32.mrf.mxu0 }
 0x11f   : > { %v852_v43 = vpack.c.bf16 %v845_v41, %v845_v41 }
 0x120   : > { %1395 = vmatmul.mubr.msk.bf16.vlgmr.msra.gmra.mxu1 %vm860_vm4, %v850_v24  ;;  %v847_v44 = vpop.f32.mrf.mxu0 }
 0x121   : > { %1406 = vmatprep.mubr.msk.bf16.mxu1 %vm1676_vm2, %v1675_v4  ;;  %v926_v45 = vsel %vm924_vm6, %v852_v43, 0  ;;  %1405 = vmatpush3.bf16.msra.mxu1 %v1519_v47 }
 0x122   : > { %v1391_v46 = vpop.f32.mrf.mxu0  ;;  %1399 = vmatpush3.bf16.msra.mxu0 %v926_v45 }
 0x1e0   : > { %v901_v28 = vpop.f32.mrf.mxu1 }
 0x1e1   : > { %v902_v29 = vadd.f32 %v1333_v27, %v901_v28 }
 0x1e2   : > { %v1396_v30 = vpop.f32.mrf.mxu1 }
 0x1e3   : > { %v909_v31 = vsel %vm907_vm5, %v902_v29, -inf  ;;  %908 = vst.msk [vmem:[%s600_s25] sm:$0xff] %vm907_vm5, %v902_v29 }
 0x1e4   : > { %910 = vmax.xlane.f32.xlu0 %v909_v31  ;;  %v904_v32 = vpop.f32.mrf.mxu1 }
 0x1e6   : > { %v1397_v33 = vpop.f32.mrf.mxu1 }
 0x26d   : > { %v911_v34 = vpop.xlane.xlu0 %910 }
 0x26e   : > { %v912_v35 = vsub.f32 %v902_v29, %v911_v34 }
 0x270   : > { %v913_v36 = vmul.f32 1.442695, %v912_v35 }
 0x272   : > { %1520 = vpow2.f32 %v913_v36 }
 0x27f   : > { %v1521_v37 = vpop.eup %1520 }
 0x280   : > { %v915_v38 = vsel %vm907_vm5, %v1521_v37, 0.0 }
 0x281   : > { %916 = vadd.xlane.f32.xlu0 %v915_v38 }
 0x30a   : > { %v917_v48 = vpop.xlane.xlu0 %916 }
 0x30b   : > { %1522 = vrcp.f32 %v917_v48 }
 0x318   : > { %v1523_v49 = vpop.eup %1522 }
 0x319   : > { %v919_v50 = vmul.f32 %v1523_v49, %v1521_v37 }
 0x31b   : > { %v920_v51 = vpack.c.bf16 %v919_v50, %v919_v50 }
 0x31d   : > { %1401 = vmatmul.mubr.msk.bf16.vlgmr.msra.gmra.mxu0 %vm907_vm5, %v920_v51 }
 0x3dd   : > { %v962_v52 = vpop.f32.mrf.mxu0 }
 0x3de   : > { %v968_v53 = vpack.c.bf16 %v962_v52, %v962_v52 }
 0x3df   : > { %v1402_v54 = vpop.f32.mrf.mxu0 }
 0x3e0   : > { %1407 = vmatmul.mubr.msk.bf16.vlgmr.msra.gmra.mxu1 %vm860_vm4, %v968_v53 }
 0x3e1   : > { %v965_v55 = vpop.f32.mrf.mxu0 }
 0x3e3   : > { %v1403_v56 = vpop.f32.mrf.mxu0 }
 0x4a0   : > { %v1015_v58 = vpop.f32.mrf.mxu1 }
 0x4a1   : > { %v1021_v59 = vadd.f32 %v1015_v58, %v969_v57 }
 0x4a2   : > { %v1408_v60 = vpop.f32.mrf.mxu1  ;;  %1026 = sbr.rel (%p1338_p8) target bundleno = 1508 (0x5e4), region = 80 }
 0x4a3   : > { %1022 = vst.msk [vmem:[#allocation2] sm:$0xff] %vm676_vm3, %v1021_v59 }
 0x4a4   : > { %v1018_v61 = vpop.f32.mrf.mxu1 }
 0x4a6   : > { %v1409_v62 = vpop.f32.mrf.mxu1 }
 0x4a7   : > { %v1339_v0 = vld [vmem:[%s2165_s24] ss:$0 sm:$0xff] }
 0x4a8   : > { %v1036_v1 = vld [vmem:[%s1895_s22] sm:$0xff] }
 0x4a9   : > { %v1340_v14 = vld [vmem:[%s2166_s15] ss:$0 sm:$0xff] }
 0x4aa   : > { %v1027_v63 = vld [vmem:[#allocation2] sm:$0xff] }
 0x4ab   : > { %v1035_v2 = vadd.f32 %v1339_v0, %v1027_v63  ;;  %v1341_v16 = vld [vmem:[%s2167_s17] ss:$0 sm:$0xff] }
 0x4ad   : > { %v1037_v3 = vadd.f32 %v1036_v1, %v1035_v2 }
 0x4af   : > { %v1038_v4 = vsel %vm676_vm3, %v1037_v3, 0.0 }
 0x4b0   : > { %1039 = vadd.xlane.f32.xlu0 %v1038_v4 }
 0x539   : > { %v1040_v5 = vpop.xlane.xlu0 %1039 }
 0x53a   : > { %v1042_v6 = vmul.f32 0.03125, %v1040_v5 }
 0x53c   : > { %v1043_v7 = vsub.f32 %v1037_v3, %v1042_v6 }
 0x53e   : > { %v1044_v8 = vmul.f32 %v1043_v7, %v1043_v7 }
 0x540   : > { %v1045_v9 = vsel %vm676_vm3, %v1044_v8, 0.0 }
 0x541   : > { %1046 = vadd.xlane.f32.xlu0 %v1045_v9 }
 0x5ca   : > { %v1047_v10 = vpop.xlane.xlu0 %1046 }
 0x5cb   : > { %v1048_v11 = vmul.f32 0.03125, %v1047_v10 }
 0x5cd   : > { %v1049_v12 = vadd.f32 1e-12, %v1048_v11 }
 0x5cf   : > { %1524 = vrsqrt.f32 %v1049_v12 }
 0x5dc   : > { %v1525_v13 = vpop.eup %1524 }
 0x5dd   : > { %v1051_v15 = vmul.f32 %v1525_v13, %v1043_v7 }
 0x5df   : > { %v1059_v17 = vmul.f32 %v1340_v14, %v1051_v15 }
 0x5e1   : > { %v1067_v18 = vadd.f32 %v1341_v16, %v1059_v17 }
 0x5e3   : > { %1068 = vst.msk [vmem:[%s593_s11] sm:$0xff] %vm676_vm3, %v1067_v18 }
 0x5e4 PF: > { %s2168_s20 = sld [smem:[#allocation16_spill]]  ;;  %s1088_s26 = sshll.u32 %s593_s11, 4  ;;  %s1089_s26 = int_to_ptr.vmem [resolvable:$true] %s1088_s26 }
 0x5e5   : > { %s2169_s3 = sld [smem:[#allocation14_spill]]  ;;  %s1526_s28 = scalar_lea.vmem %s1089_s26, 128 }
 0x5e6   : > { %s2171_s0 = sld [smem:[#allocation36_spill]]  ;;  %p1527_p9 = scmp.ne.s32.totalorder %s1089_s26, %s1526_s28 }
 0x5e7   : > { %s1677_s1 = smov [#allocation4]  }
 0x5e8   : > { %p1528_p10 = pnand %p1527_p9, %p1825_p3  ;;  %s1530_s2 = sshll.u32 %s1677_s1, 4  ;;  %s1531_s2 = int_to_ptr.vmem [resolvable:$false] %s1530_s2 }
 0x5e9   : > { %s1532_s24 = scalar_lea.vmem %s1531_s2, 256  ;;  %p1533_p0 = scmp.lt.s32.totalorder %s1089_s26, %s1531_s2 }
 0x5ea   : > { %s1344_s30 = sshll.u32 %s2168_s20, 7  ;;  %p1529_p11 = pneg %p1528_p10 }
 0x5eb   : > { %s2172_s12 = sand.u32 1, %s2169_s3   ;;  %p1534_p1 = scmp.lt.s32.totalorder %s1532_s24, %s1526_s28 }
 0x5ec   : > { %s1086_s18 = scalar_lea.hbm %s2171_s0, %s1344_s30  ;;  %s1070_s29 = scalar_lea.sflag [#allocation5], %s2172_s12 }
 0x5ed   : > { %p1535_p4 = por %p1534_p1, %p1533_p0 }
 0x5ef   : > { %p1536_p2 = pnand %p1535_p4, %p1529_p11 }
 0x5f1   : > { %1539 = shalt.err (!%p1536_p2)
}
 0x5f2   : > { %s1540_s9 = scalar_lea.hbm %s1086_s18, 128  ;;  %s1544_s22 = scalar_lea.hbm %s2171_s0, 256 }
 0x5f3   : > { %p1541_p5 = scmp.ne.s32.totalorder %s1086_s18, %s1540_s9  ;;  %p1545_p9 = scmp.lt.s32.totalorder %s1086_s18, %s2171_s0 }
 0x5f4   : > { %p1546_p10 = scmp.lt.s32.totalorder %s1544_s22, %s1540_s9 }
 0x5f5   : > { %p1542_p6 = pnand %p1541_p5, %p1825_p3 }
 0x5f6   : > { %p1547_p13 = por %p1546_p10, %p1545_p9 }
 0x5f7   : > { %p1543_p8 = pneg %p1542_p6 }
 0x5f9   : > { %p1548_p7 = pnand %p1547_p13, %p1543_p8 }
 0x5fb   : > { %1551 = shalt.err (!%p1548_p7)
}
 0x5fc   : > { %s2173_s23 = sld [smem:[#allocation11_spill]]  ;;  %s1345_s3 = sshll.u32 %s2168_s20, 1 }
 0x5fd   : > { %1410 = dma.vmem_to_hbm [thread:$0]  (%p1825_p3), %s1089_s26, 128, %s1086_s18, %s1070_s29  }
 0x5fe   : > { %s1103_s30 = sshll.u32 %s600_s25, 4  ;;  %s1099_s21 = sadd.s32 %s1656_s19, %s1345_s3  ;;  %s1104_s30 = int_to_ptr.vmem [resolvable:$true] %s1103_s30 }
 0x5ff   : > { %s1346_s27 = sshll.u32 %s1099_s21, 7  ;;  %s2175_s1 = sld [smem:[#allocation37_spill]] }
 0x600   : > { %s1552_s14 = scalar_lea.vmem %s1104_s30, 128  ;;  %s1678_s10 = smov [#allocation6]  }
 0x601   : > { %p1553_p7 = scmp.ne.s32.totalorder %s1104_s30, %s1552_s14  ;;  %s1556_s11 = sshll.u32 %s1678_s10, 4  ;;  %s1557_s11 = int_to_ptr.vmem [resolvable:$false] %s1556_s11 }
 0x602   : > { %s2176_s24 = sand.u32 1, %s2173_s23   ;;  %s1558_s20 = scalar_lea.vmem %s1557_s11, 256 }
 0x603   : > { %s1075_s9 = scalar_lea.sflag [#allocation7], %s2176_s24  ;;  %p1554_p13 = pnand %p1553_p7, %p1854_p12 }
 0x604   : > { %p1559_p3 = scmp.lt.s32.totalorder %s1104_s30, %s1557_s11  ;;  %p1560_p0 = scmp.lt.s32.totalorder %s1558_s20, %s1552_s14 }
 0x605   : > { %s1101_s2 = scalar_lea.hbm %s2175_s1, %s1346_s27  ;;  %p1555_p11 = pneg %p1554_p13 }
 0x606   : > { %p1561_p1 = por %p1560_p0, %p1559_p3 }
 0x608   : > { %p1562_p4 = pnand %p1561_p1, %p1555_p11 }
 0x60a   : > { %1565 = shalt.err (!%p1562_p4)
}
 0x60b   : > { %s1566_s19 = scalar_lea.hbm %s1101_s2, 128  ;;  %s1570_s18 = scalar_lea.hbm %s2175_s1, 512 }
 0x60c   : > { %p1567_p2 = scmp.ne.s32.totalorder %s1101_s2, %s1566_s19  ;;  %p1571_p8 = scmp.lt.s32.totalorder %s1101_s2, %s2175_s1 }
 0x60d   : > { %p1572_p9 = scmp.lt.s32.totalorder %s1570_s18, %s1566_s19 }
 0x60e   : > { %p1568_p5 = pnand %p1567_p2, %p1854_p12 }
 0x60f   : > { %p1573_p10 = por %p1572_p9, %p1571_p8 }
 0x610   : > { %p1569_p6 = pneg %p1568_p5 }
 0x612   : > { %p1574_p7 = pnand %p1573_p10, %p1569_p6 }
 0x614   : > { %1577 = shalt.err (!%p1574_p7)
}
 0x615   : > { %1411 = dma.vmem_to_hbm [thread:$0]  (%p1854_p12), %s1104_s30, 128, %s1101_s2, %s1075_s9  }
 0x616 PF: > { %s2177_s22 = sld [smem:[#allocation19_spill]] }
 0x617   : > { %s2178_s15 = sld [smem:[#allocation13_spill]] }
 0x618   : > { %s2179_s13 = sld [smem:[#allocation23_spill]] }
 0x61c   : > { %p1421_p13 = scmp.ge.s32.totalorder %s2177_s22, 2 }
 0x61d   : > { %s1115_s23 = sand.u32 1, %s2178_s15  }
 0x61e   : > { %p2180_p11 = scmp.ne.s32.totalorder %s2179_s13, 0  ;;  %s1116_s3 = scalar_lea.sflag [#allocation5], %s1115_s23 }
 0x620   : > { %p1415_p3 = pnand %p1421_p13, %p2180_p11 }
 0x622   : > { %p1416_p0 = pneg %p1415_p3 }
 0x624   : > { %1623 = dma.done.wait (%p1416_p0), %s1116_s3, 128  }
 0x625   : > { %1625 = vsyncadd (%p1416_p0), %s1116_s3, 4294967168  ;;  %s2181_s21 = sld [smem:[#allocation10_spill]] }
 0x626   : > { %s2182_s27 = sld [smem:[#allocation27_spill]] }
 0x62b   : > { %s1124_s12 = sand.u32 1, %s2181_s21  }
 0x62c   : > { %p2183_p1 = scmp.ne.s32.totalorder %s2182_s27, 0  ;;  %s1125_s17 = scalar_lea.sflag [#allocation7], %s1124_s12 }
 0x62e   : > { %p1418_p4 = pnand %p1421_p13, %p2183_p1 }
 0x630   : > { %p1419_p2 = pneg %p1418_p4 }
 0x632   : > { %1627 = dma.done.wait (%p1419_p2), %s1125_s17, 128  }
 0x633   : > { %1629 = vsyncadd (%p1419_p2), %s1125_s17, 4294967168  ;;  %s31_s23 = sadd.s32 1, %s2177_s22   ;;  %s2184_s29 = sld [smem:[#allocation11_spill]] }
 0x634   : > { %p28_p12 = scmp.ge.s32.totalorder %s31_s23, 6   ;;  %s2185_s30 = sld [smem:[#allocation12_spill]] }
 0x635   : > { %s2186_s15 = sld [smem:[#allocation26_spill]] }
 0x636   : > { %s2187_s16 = sld [smem:[#allocation14_spill]] }
 0x637   : > { %s2188_s17 = sld [smem:[#allocation15_spill]] }
 0x638   : > { %s2189_s18 = sld [smem:[#allocation25_spill]]  ;;  %30 = sbr.rel (!%p28_p12) target bundleno = 20 (0x14), region = 159 }
 0x639   : > { %s2190_s19 = sld [smem:[#allocation17_spill]] }
 0x63a   : > { %s2191_s20 = sld [smem:[#allocation18_spill]] }
 0x63b   : > { %s2192_s21 = sld [smem:[#allocation20_spill]] }
 0x63c   : > { %s2193_s22 = sld [smem:[#allocation22_spill]] }
 0x63d   :  { %1130 = vsyncpa [#allocation5], 1 }
 0x63e   :  { %1132 = vsyncpa [#allocation5 + $0x1], 1 }
 0x63f   :  { %1133 = vsyncpa [#allocation7], 1 }
 0x640   :  { %1135 = vsyncpa [#allocation7 + $0x1], 1 }

</bundles_post_ra>
